<compile_context>
chip_gen: v7x
topology: tpu7x:2x2x1
jax: 0.10.0
libtpu: 0.0.40
codegen_flags: <defaults>
</compile_context>

<pallas_src>
import functools

import jax
import jax.numpy as jnp
from jax.experimental import pallas as pl
from jax.experimental.pallas import tpu as pltpu


def _round_up(x, m):
    return ((x + m - 1) // m) * m


def _vmem_capacity_bytes():
    try:
        return int(pltpu.get_tpu_info().vmem_capacity_bytes)
    except Exception:
        return 64 << 20  # conservative: v7x per-TensorCore VMEM


# ---------------------------------------------------------------------------
# Fully fused kernel: whole weight stack resident in VMEM, batch tiled.
# ---------------------------------------------------------------------------
def _mlp_kernel(*refs, num_layers, matmul_dtype):
    """refs = (x_ref, w0, b0, w1, b1, ..., out_ref); all layers fused."""
    x_ref = refs[0]
    out_ref = refs[-1]
    h = x_ref[...].astype(jnp.float32)
    for l in range(num_layers):
        w_ref = refs[1 + 2 * l]
        b_ref = refs[2 + 2 * l]
        acc = jnp.dot(h.astype(matmul_dtype), w_ref[...].astype(matmul_dtype),
                      preferred_element_type=jnp.float32)
        acc = acc + b_ref[...].astype(jnp.float32)        # (1, N) broadcasts over rows
        if l < num_layers - 1:
            acc = jnp.tanh(acc)                           # f32 epilogue on EUP
        h = acc
    out_ref[...] = h.astype(out_ref.dtype)


# ---------------------------------------------------------------------------
# Fallback: one pallas_call per layer (batch x out-feature tiling), used only
# when the resident weight stack alone would not fit in the VMEM budget.
# ---------------------------------------------------------------------------
def _linear_kernel(x_ref, w_ref, b_ref, o_ref, *, apply_act, matmul_dtype):
    acc = jnp.dot(x_ref[...].astype(matmul_dtype), w_ref[...].astype(matmul_dtype),
                  preferred_element_type=jnp.float32)
    acc = acc + b_ref[...].astype(jnp.float32)
    if apply_act:
        acc = jnp.tanh(acc)
    o_ref[...] = acc.astype(o_ref.dtype)


def _layerwise_forward(pparams, xp, batch, sizes, out_dtype, matmul_dtype, vmem_limit):
    # TODO(synk): add K-dim tiling inside this fallback for very wide layers.
    num_layers = len(pparams)
    tm = min(256, _round_up(batch, 8))
    Bp = _round_up(batch, tm)
    h = xp if Bp == xp.shape[0] else jnp.pad(xp, ((0, Bp - xp.shape[0]), (0, 0)))
    for l, (w, b) in enumerate(pparams):
        K, N = w.shape
        tn = next(t for t in (512, 256, 128) if N % t == 0)
        kernel = functools.partial(_linear_kernel,
                                   apply_act=(l < num_layers - 1),
                                   matmul_dtype=matmul_dtype)
        h = pl.pallas_call(
            kernel,
            out_shape=jax.ShapeDtypeStruct((Bp, N), out_dtype),
            grid=(Bp // tm, N // tn),
            in_specs=[pl.BlockSpec((tm, K), lambda i, j: (i, 0)),
                      pl.BlockSpec((K, tn), lambda i, j: (0, j)),
                      pl.BlockSpec((1, tn), lambda i, j: (0, j))],
            out_specs=pl.BlockSpec((tm, tn), lambda i, j: (i, j)),
            compiler_params=pltpu.CompilerParams(
                dimension_semantics=("parallel", "parallel"),
                vmem_limit_bytes=vmem_limit),
        )(h, w, b)
    return h[:batch, :sizes[-1]]


# ---------------------------------------------------------------------------
# Wrapper
# ---------------------------------------------------------------------------
def _pad_params(params, in_dim, matmul_dtype):
    """Zero-pad all feature dims to multiples of 128 lanes."""
    sizes = (in_dim,) + tuple(int(w.shape[1]) for w, _ in params)
    sizes_p = tuple(_round_up(s, 128) for s in sizes)
    pparams = []
    for l, (w, b) in enumerate(params):
        wp = jnp.zeros((sizes_p[l], sizes_p[l + 1]), matmul_dtype)
        wp = wp.at[:sizes[l], :sizes[l + 1]].set(w.astype(matmul_dtype))
        bp = jnp.zeros((1, sizes_p[l + 1]), jnp.float32)
        bp = bp.at[0, :sizes[l + 1]].set(b.astype(jnp.float32))
        pparams.append((wp, bp))
    return sizes, sizes_p, pparams


def mlp_forward(params, x, *, matmul_dtype=jnp.bfloat16, block_batch=None):
    """Fused Sequential(Linear, Tanh, ..., Linear) forward via one pallas_call."""
    B, in_dim = x.shape
    num_layers = len(params)
    out_dtype = x.dtype
    sizes, sizes_p, pparams = _pad_params(params, in_dim, matmul_dtype)

    # Feature-pad x (padded lanes stay zero through the stack: tanh(0)=0 and the
    # corresponding weight rows of the next layer are zero).
    xp = x if sizes_p[0] == sizes[0] else jnp.pad(x, ((0, 0), (0, sizes_p[0] - sizes[0])))

    cap = _vmem_capacity_bytes()
    budget = min(int(cap * 0.6), 64 << 20)                 # generation-aware working budget
    vmem_limit = int(min(cap - (4 << 20), budget + (8 << 20)))

    fixed = sum(int(w.nbytes) + int(b.nbytes) for w, b in pparams)  # single-buffered residents
    itemsize = jnp.dtype(out_dtype).itemsize
    per_row = 2 * (sizes_p[0] + sizes_p[-1]) * itemsize + max(sizes_p) * 4

    if fixed + 8 * per_row > budget:
        # Weights alone don't fit (e.g. large MLP on v7x's 64 MiB VMEM).
        return _layerwise_forward(pparams, xp, B, sizes, out_dtype, matmul_dtype, vmem_limit)

    # --- batch tile selection ---
    Bp8 = _round_up(B, 8)
    max_rows = max((((budget - fixed) // per_row) // 8) * 8, 8)
    if block_batch is not None:
        tm = max(8, _round_up(int(block_batch), 8))
    elif Bp8 <= 256:
        tm = min(Bp8, max_rows)                            # small batch -> single tile
    else:
        tm = min(256, max_rows)                            # MXU-saturating tile
        grid_len = pl.cdiv(Bp8, tm)
        if grid_len > 1 and grid_len % 2 == 1:
            # v7x megacore: keep the parallel grid even so both TCs get work.
            grid_len += 1
            tm = max(8, _round_up(-(-Bp8 // grid_len), 8))
    tm = max(8, min(tm, max_rows))

    Bp = _round_up(B, tm)
    if Bp != xp.shape[0]:
        xp = jnp.pad(xp, ((0, Bp - xp.shape[0]), (0, 0)))
    grid = (Bp // tm,)

    flat_args = [xp]
    for w, b in pparams:
        flat_args += [w, b]

    cost = pl.CostEstimate(
        flops=int(2 * B * sum(sizes[i] * sizes[i + 1] for i in range(num_layers))),
        transcendentals=int(B * sum(sizes[1:-1])),
        bytes_accessed=int(xp.nbytes) + fixed + int(B * sizes[-1] * itemsize),
    )

    kernel = functools.partial(_mlp_kernel, num_layers=num_layers, matmul_dtype=matmul_dtype)

    def make_specs(const_pipeline_mode):
        in_specs = [pl.BlockSpec((tm, sizes_p[0]), lambda i: (i, 0))]
        for l in range(num_layers):
            if const_pipeline_mode is None:
                in_specs.append(pl.BlockSpec((sizes_p[l], sizes_p[l + 1]), lambda i: (0, 0)))
                in_specs.append(pl.BlockSpec((1, sizes_p[l + 1]), lambda i: (0, 0)))
            else:
                in_specs.append(pl.BlockSpec((sizes_p[l], sizes_p[l + 1]), lambda i: (0, 0),
                                             pipeline_mode=const_pipeline_mode))
                in_specs.append(pl.BlockSpec((1, sizes_p[l + 1]), lambda i: (0, 0),
                                             pipeline_mode=const_pipeline_mode))
        out_spec = pl.BlockSpec((tm, sizes_p[-1]), lambda i: (i, 0))
        return in_specs, out_spec

    def run(pipeline_mode):
        in_specs, out_spec = make_specs(pipeline_mode)
        return pl.pallas_call(
            kernel,
            out_shape=jax.ShapeDtypeStruct((Bp, sizes_p[-1]), out_dtype),
            grid=grid,
            in_specs=in_specs,
            out_specs=out_spec,
            compiler_params=pltpu.CompilerParams(
                dimension_semantics=("parallel",),         # batch tiles independent
                vmem_limit_bytes=vmem_limit),
            cost_estimate=cost,
        )(*flat_args)

    try:
        # Constant-index weight/bias blocks: single buffer (no 2x VMEM).
        out = run(pl.Buffered(1))
    except Exception:
        out = run(None)   # safety net: default double buffering
    return out[:B, :sizes[-1]]


# ---------------------------------------------------------------------------
# Reference + init (PyTorch nn.Linear semantics; weight stored as (in, out))
# ---------------------------------------------------------------------------
def init_mlp_params(key, sizes, dtype=jnp.float32):
    params = []
    for i in range(len(sizes) - 1):
        key, kw, kb = jax.random.split(key, 3)
        bound = 1.0 / jnp.sqrt(sizes[i])
        w = jax.random.uniform(kw, (sizes[i], sizes[i + 1]), dtype,
                               minval=-bound, maxval=bound)
        b = jax.random.uniform(kb, (sizes[i + 1],), dtype,
                               minval=-bound, maxval=bound)
        params.append((w, b))
    return params


def mlp_reference(params, x):
    n = len(params)
    h = x
    for i, (w, b) in enumerate(params):
        h = h @ w + b
        if i < n - 1:
            h = jnp.tanh(h)
    return h


if __name__ == "__main__":
    key = jax.random.PRNGKey(0)
    sizes = (32, 64, 16)   # e.g. MLP((clip_dim, hidden, out_dim)) at small scale
    batch = 40             # not a multiple of 8/128 -> exercises padding paths

    kx, kp = jax.random.split(key)
    x = jax.random.normal(kx, (batch, sizes[0]), jnp.float32)
    params = init_mlp_params(kp, sizes)
    y_ref = mlp_reference(params, x)

    # f32 matmul operands: exact-ish check against the reference (single batch tile).
    y_f32 = jax.block_until_ready(mlp_forward(params, x, matmul_dtype=jnp.float32))
    assert y_f32.shape == (batch, sizes[-1])
    assert jnp.allclose(y_f32, y_ref, atol=1e-5, rtol=1e-5), "f32 path mismatch"

    # Default bf16-operand / f32-accumulate path (fast path on v6e/v7x).
    y_bf16 = jax.block_until_ready(mlp_forward(params, x))
    assert jnp.allclose(y_bf16, y_ref, atol=2e-2, rtol=2e-2), "bf16 path mismatch"

    # Exercise the multi-tile batch path (correctness only; perf default is one tile here).
    y_tiled = jax.block_until_ready(
        mlp_forward(params, x, matmul_dtype=jnp.float32, block_batch=16))
    assert jnp.allclose(y_tiled, y_ref, atol=1e-5, rtol=1e-5), "tiled path mismatch"

    print("KERNEL_OK")
</pallas_src>

<mosaic_0001>
module attributes {stable_mosaic.version = 11 : i64} {
  func.func @_mlp_kernel(%arg0: i32, %arg1: memref<40x128xf32, #tpu.memory_space<vmem>>, %arg2: memref<128x128xf32, #tpu.memory_space<vmem>>, %arg3: memref<1x128xf32, #tpu.memory_space<vmem>>, %arg4: memref<128x128xf32, #tpu.memory_space<vmem>>, %arg5: memref<1x128xf32, #tpu.memory_space<vmem>>, %arg6: memref<40x128xf32, #tpu.memory_space<vmem>>) attributes {dimension_semantics = [#tpu.dimension_semantics<parallel>], iteration_bounds = array<i64: 1>, scalar_prefetch = 0 : i64, scratch_operands = 0 : i64, tpu.core_type = #tpu.core_type<tc>, window_params = [{transform_indices = @transform_0, window_bounds = array<i64: 40, 128>}, {pipeline_mode = #tpu.pipeline_mode<synchronous>, transform_indices = @transform_1, window_bounds = array<i64: 128, 128>}, {pipeline_mode = #tpu.pipeline_mode<synchronous>, transform_indices = @transform_2, window_bounds = array<i64: 1, 128>}, {pipeline_mode = #tpu.pipeline_mode<synchronous>, transform_indices = @transform_3, window_bounds = array<i64: 128, 128>}, {pipeline_mode = #tpu.pipeline_mode<synchronous>, transform_indices = @transform_4, window_bounds = array<i64: 1, 128>}, {transform_indices = @transform_5, window_bounds = array<i64: 40, 128>}]} {
    %c0 = arith.constant 0 : index
    %c0_0 = arith.constant 0 : index
    %0 = vector.load %arg1[%c0, %c0_0] : memref<40x128xf32, #tpu.memory_space<vmem>>, vector<40x128xf32>
    %c0_1 = arith.constant 0 : index
    %c0_2 = arith.constant 0 : index
    %1 = vector.load %arg2[%c0_1, %c0_2] : memref<128x128xf32, #tpu.memory_space<vmem>>, vector<128x128xf32>
    %cst = arith.constant dense<0.000000e+00> : vector<40x128xf32>
    %2 = tpu.matmul %0, %1, %cst {dimension_numbers = #tpu.dot_dimension_numbers<[1], [0], [0], [1], [0, 0, 1, 1], [], []>} : vector<40x128xf32>, vector<128x128xf32>, vector<40x128xf32> -> vector<40x128xf32>
    %c0_3 = arith.constant 0 : index
    %c0_4 = arith.constant 0 : index
    %3 = vector.load %arg3[%c0_3, %c0_4] : memref<1x128xf32, #tpu.memory_space<vmem>>, vector<1x128xf32>
    %4 = vector.broadcast %3 : vector<1x128xf32> to vector<40x128xf32>
    %5 = arith.addf %2, %4 : vector<40x128xf32>
    %6 = math.tanh %5 : vector<40x128xf32>
    %c0_5 = arith.constant 0 : index
    %c0_6 = arith.constant 0 : index
    %7 = vector.load %arg4[%c0_5, %c0_6] : memref<128x128xf32, #tpu.memory_space<vmem>>, vector<128x128xf32>
    %cst_7 = arith.constant dense<0.000000e+00> : vector<40x128xf32>
    %8 = tpu.matmul %6, %7, %cst_7 {dimension_numbers = #tpu.dot_dimension_numbers<[1], [0], [0], [1], [0, 0, 1, 1], [], []>} : vector<40x128xf32>, vector<128x128xf32>, vector<40x128xf32> -> vector<40x128xf32>
    %c0_8 = arith.constant 0 : index
    %c0_9 = arith.constant 0 : index
    %9 = vector.load %arg5[%c0_8, %c0_9] : memref<1x128xf32, #tpu.memory_space<vmem>>, vector<1x128xf32>
    %10 = vector.broadcast %9 : vector<1x128xf32> to vector<40x128xf32>
    %11 = arith.addf %8, %10 : vector<40x128xf32>
    %c0_10 = arith.constant 0 : index
    %c0_11 = arith.constant 0 : index
    %12 = vector.load %arg6[%c0_10, %c0_11] : memref<40x128xf32, #tpu.memory_space<vmem>>, vector<40x128xf32>
    tpu.vector_store %arg6[%c0_10, %c0_11], %11 {strides = array<i32>} : memref<40x128xf32, #tpu.memory_space<vmem>>, vector<40x128xf32>,
    return
  }
  func.func @transform_0(%arg0: i32) -> (i32, i32) {
    %c0_i32 = arith.constant 0 : i32
    %c0_i32_0 = arith.constant 0 : i32
    return %arg0, %c0_i32 : i32, i32
  }
  func.func @transform_1(%arg0: i32) -> (i32, i32) {
    %c0_i32 = arith.constant 0 : i32
    %c0_i32_0 = arith.constant 0 : i32
    %c0_i32_1 = arith.constant 0 : i32
    return %c0_i32, %c0_i32_0 : i32, i32
  }
  func.func @transform_2(%arg0: i32) -> (i32, i32) {
    %c0_i32 = arith.constant 0 : i32
    %c0_i32_0 = arith.constant 0 : i32
    %c0_i32_1 = arith.constant 0 : i32
    return %c0_i32, %c0_i32_0 : i32, i32
  }
  func.func @transform_3(%arg0: i32) -> (i32, i32) {
    %c0_i32 = arith.constant 0 : i32
    %c0_i32_0 = arith.constant 0 : i32
    %c0_i32_1 = arith.constant 0 : i32
    return %c0_i32, %c0_i32_0 : i32, i32
  }
  func.func @transform_4(%arg0: i32) -> (i32, i32) {
    %c0_i32 = arith.constant 0 : i32
    %c0_i32_0 = arith.constant 0 : i32
    %c0_i32_1 = arith.constant 0 : i32
    return %c0_i32, %c0_i32_0 : i32, i32
  }
  func.func @transform_5(%arg0: i32) -> (i32, i32) {
    %c0_i32 = arith.constant 0 : i32
    %c0_i32_0 = arith.constant 0 : i32
    return %arg0, %c0_i32 : i32, i32
  }
}

module attributes {stable_mosaic.version = 11 : i64} {
  func.func @_mlp_kernel(%arg0: i32, %arg1: memref<40x128xf32, #tpu.memory_space<vmem>>, %arg2: memref<128x128xf32, #tpu.memory_space<vmem>>, %arg3: memref<1x128xf32, #tpu.memory_space<vmem>>, %arg4: memref<128x128xf32, #tpu.memory_space<vmem>>, %arg5: memref<1x128xf32, #tpu.memory_space<vmem>>, %arg6: memref<40x128xf32, #tpu.memory_space<vmem>>) attributes {dimension_semantics = [#tpu.dimension_semantics<parallel>], iteration_bounds = array<i64: 1>, scalar_prefetch = 0 : i64, scratch_operands = 0 : i64, tpu.core_type = #tpu.core_type<tc>, window_params = [{transform_indices = @transform_0, window_bounds = array<i64: 40, 128>}, {pipeline_mode = #tpu.pipeline_mode<synchronous>, transform_indices = @transform_1, window_bounds = array<i64: 128, 128>}, {pipeline_mode = #tpu.pipeline_mode<synchronous>, transform_indices = @transform_2, window_bounds = array<i64: 1, 128>}, {pipeline_mode = #tpu.pipeline_mode<synchronous>, transform_indices = @transform_3, window_bounds = array<i64: 128, 128>}, {pipeline_mode = #tpu.pipeline_mode<synchronous>, transform_indices = @transform_4, window_bounds = array<i64: 1, 128>}, {transform_indices = @transform_5, window_bounds = array<i64: 40, 128>}]} {
    %c0 = arith.constant 0 : index
    %c0_0 = arith.constant 0 : index
    %0 = vector.load %arg1[%c0, %c0_0] : memref<40x128xf32, #tpu.memory_space<vmem>>, vector<40x128xf32>
    %c0_1 = arith.constant 0 : index
    %c0_2 = arith.constant 0 : index
    %1 = vector.load %arg2[%c0_1, %c0_2] : memref<128x128xf32, #tpu.memory_space<vmem>>, vector<128x128xf32>
    %cst = arith.constant dense<0.000000e+00> : vector<40x128xf32>
    %2 = tpu.matmul %0, %1, %cst {dimension_numbers = #tpu.dot_dimension_numbers<[1], [0], [0], [1], [0, 0, 1, 1], [], []>} : vector<40x128xf32>, vector<128x128xf32>, vector<40x128xf32> -> vector<40x128xf32>
    %c0_3 = arith.constant 0 : index
    %c0_4 = arith.constant 0 : index
    %3 = vector.load %arg3[%c0_3, %c0_4] : memref<1x128xf32, #tpu.memory_space<vmem>>, vector<1x128xf32>
    %4 = vector.broadcast %3 : vector<1x128xf32> to vector<40x128xf32>
    %5 = arith.addf %2, %4 : vector<40x128xf32>
    %6 = math.tanh %5 : vector<40x128xf32>
    %c0_5 = arith.constant 0 : index
    %c0_6 = arith.constant 0 : index
    %7 = vector.load %arg4[%c0_5, %c0_6] : memref<128x128xf32, #tpu.memory_space<vmem>>, vector<128x128xf32>
    %cst_7 = arith.constant dense<0.000000e+00> : vector<40x128xf32>
    %8 = tpu.matmul %6, %7, %cst_7 {dimension_numbers = #tpu.dot_dimension_numbers<[1], [0], [0], [1], [0, 0, 1, 1], [], []>} : vector<40x128xf32>, vector<128x128xf32>, vector<40x128xf32> -> vector<40x128xf32>
    %c0_8 = arith.constant 0 : index
    %c0_9 = arith.constant 0 : index
    %9 = vector.load %arg5[%c0_8, %c0_9] : memref<1x128xf32, #tpu.memory_space<vmem>>, vector<1x128xf32>
    %10 = vector.broadcast %9 : vector<1x128xf32> to vector<40x128xf32>
    %11 = arith.addf %8, %10 : vector<40x128xf32>
    %c0_10 = arith.constant 0 : index
    %c0_11 = arith.constant 0 : index
    %12 = vector.load %arg6[%c0_10, %c0_11] : memref<40x128xf32, #tpu.memory_space<vmem>>, vector<40x128xf32>
    tpu.vector_store %arg6[%c0_10, %c0_11], %11 {strides = array<i32>} : memref<40x128xf32, #tpu.memory_space<vmem>>, vector<40x128xf32>,
    return
  }
  func.func @transform_0(%arg0: i32) -> (i32, i32) {
    %c0_i32 = arith.constant 0 : i32
    %c0_i32_0 = arith.constant 0 : i32
    return %arg0, %c0_i32 : i32, i32
  }
  func.func @transform_1(%arg0: i32) -> (i32, i32) {
    %c0_i32 = arith.constant 0 : i32
    %c0_i32_0 = arith.constant 0 : i32
    %c0_i32_1 = arith.constant 0 : i32
    return %c0_i32, %c0_i32_0 : i32, i32
  }
  func.func @transform_2(%arg0: i32) -> (i32, i32) {
    %c0_i32 = arith.constant 0 : i32
    %c0_i32_0 = arith.constant 0 : i32
    %c0_i32_1 = arith.constant 0 : i32
    return %c0_i32, %c0_i32_0 : i32, i32
  }
  func.func @transform_3(%arg0: i32) -> (i32, i32) {
    %c0_i32 = arith.constant 0 : i32
    %c0_i32_0 = arith.constant 0 : i32
    %c0_i32_1 = arith.constant 0 : i32
    return %c0_i32, %c0_i32_0 : i32, i32
  }
  func.func @transform_4(%arg0: i32) -> (i32, i32) {
    %c0_i32 = arith.constant 0 : i32
    %c0_i32_0 = arith.constant 0 : i32
    %c0_i32_1 = arith.constant 0 : i32
    return %c0_i32, %c0_i32_0 : i32, i32
  }
  func.func @transform_5(%arg0: i32) -> (i32, i32) {
    %c0_i32 = arith.constant 0 : i32
    %c0_i32_0 = arith.constant 0 : i32
    return %arg0, %c0_i32 : i32, i32
  }
}

</mosaic_0001>

<bundles_post_ra>
// kernel: tpu_custom_call.1
= control target key start
LH: loop header
LB: loop body
LE: loop exit
PB: predicated region body
PF: predicated region fallthrough
CT: control target
= control target key end

     0   :  { %10 = vsyncpa [#allocation3], 0  ;;  %s768_s0 = inlined_call_operand.hbm [shape: f32[40,128], index: 0, kind: input, shape index: {}]   ;;  %s769_s1 = inlined_call_operand.hbm [shape: f32[128,128], index: 1, kind: input, shape index: {}]   ;;  %s770_s2 = inlined_call_operand.vmem [shape: f32[1,128], index: 2, kind: input, shape index: {}]   ;;  %s771_s3 = inlined_call_operand.hbm [shape: f32[128,128], index: 3, kind: input, shape index: {}]   ;;  %s772_s4 = inlined_call_operand.vmem [shape: f32[1,128], index: 4, kind: input, shape index: {}]   ;;  %s773_s5 = inlined_call_operand.hbm [shape: f32[40,128], index: 5, kind: output, shape index: {}]  }
   0x1   :  { %11 = vsyncpa [#allocation6], 0 }
   0x2   :  { %12 = vsyncpa [#allocation4], 0  ;;  %s620_s18 = smov [#allocation5]   ;;  %s621_s20 = smov [#allocation2]  }
   0x3   :  { %s30_s19 = sshll.u32 %s620_s18, 4  ;;  %s18_s21 = sshll.u32 %s621_s20, 4  ;;  %s31_s19 = int_to_ptr.vmem [resolvable:$true] %s30_s19  ;;  %s659_s21 = int_to_ptr.vmem [resolvable:$true] %s18_s21 }
   0x4   :  { %s526_s24 = scalar_lea.hbm %s769_s1, 2048 }
   0x5   :  { %p527_p0 = scmp.ne.s32.totalorder %s769_s1, %s526_s24  ;;  %p530_p1 = scmp.lt.u32.totalorder %s526_s24, %s769_s1 }
   0x7   :  { %p532_p2 = pnand %p530_p1, %p527_p0 }
   0x9   :  { %535 = shalt.err (!%p532_p2)
}
   0xa   :  { %s536_s29 = scalar_lea.vmem %s31_s19, 2048  ;;  %p541_p4 = scmp.lt.s32.totalorder %s31_s19, %s31_s19 }
   0xb   :  { %p537_p3 = scmp.ne.s32.totalorder %s31_s19, %s536_s29  ;;  %p542_p5 = scmp.lt.s32.totalorder %s536_s29, %s536_s29 }
   0xd   :  { %p543_p6 = por %p542_p5, %p541_p4 }
   0xf   :  { %p544_p7 = pnand %p543_p6, %p537_p3 }
  0x11   :  { %547 = shalt.err (!%p544_p7)
}
  0x12   :  { %s622_s30 = smov 128   ;;  %s623_s6 = smov 8  }
  0x13   :  { %36 = dma.hbm_to_vmem [thread:$0]  %s769_s1, 2048, %s31_s19, [#allocation6], %s622_s30, %s622_s30, %s623_s6  }
  0x14   :  { %s548_s11 = scalar_lea.hbm %s768_s0, 640 }
  0x15   :  { %p549_p8 = scmp.ne.s32.totalorder %s768_s0, %s548_s11  ;;  %p552_p9 = scmp.lt.u32.totalorder %s548_s11, %s768_s0 }
  0x17   :  { %p554_p10 = pnand %p552_p9, %p549_p8 }
  0x19   :  { %557 = shalt.err (!%p554_p10)
}
  0x1a   :  { %s558_s16 = scalar_lea.vmem %s659_s21, 640  ;;  %p563_p12 = scmp.lt.s32.totalorder %s659_s21, %s659_s21 }
  0x1b   :  { %p559_p11 = scmp.ne.s32.totalorder %s659_s21, %s558_s16  ;;  %p564_p13 = scmp.lt.s32.totalorder %s558_s16, %s558_s16 }
  0x1d   :  { %p565_p0 = por %p564_p13, %p563_p12 }
  0x1f   :  { %p566_p1 = pnand %p565_p0, %p559_p11 }
  0x21   :  { %569 = shalt.err (!%p566_p1)
}
  0x22   :  { %24 = dma.hbm_to_vmem [thread:$0]  %s768_s0, 640, %s659_s21, [#allocation3], %s622_s30, %s622_s30, %s623_s6  }
  0x23   :  { %s624_s18 = smov [#allocation7]   ;;  %s570_s23 = scalar_lea.hbm %s771_s3, 2048 }
  0x24   :  { %s44_s19 = sshll.u32 %s624_s18, 4  ;;  %p571_p2 = scmp.ne.s32.totalorder %s771_s3, %s570_s23  ;;  %s45_s19 = int_to_ptr.vmem [resolvable:$true] %s44_s19 }
  0x25   :  { %p574_p3 = scmp.lt.u32.totalorder %s570_s23, %s771_s3 }
  0x27   :  { %p576_p4 = pnand %p574_p3, %p571_p2 }
  0x29   :  { %579 = shalt.err (!%p576_p4)
}
  0x2a   :  { %s580_s28 = scalar_lea.vmem %s45_s19, 2048  ;;  %p585_p6 = scmp.lt.s32.totalorder %s45_s19, %s45_s19 }
  0x2b   :  { %p581_p5 = scmp.ne.s32.totalorder %s45_s19, %s580_s28  ;;  %p586_p7 = scmp.lt.s32.totalorder %s580_s28, %s580_s28 }
  0x2d   :  { %p587_p8 = por %p586_p7, %p585_p6 }
  0x2f   :  { %p588_p9 = pnand %p587_p8, %p581_p5 }
  0x31   :  { %591 = shalt.err (!%p588_p9)
}
  0x32   :  { %50 = dma.hbm_to_vmem [thread:$0]  %s771_s3, 2048, %s45_s19, [#allocation6], %s622_s30, %s622_s30, %s623_s6  }
  0x33   :  { %614 = dma.done.wait [#allocation3], 640  }
  0x34   :  { %615 = vsyncadd [#allocation3], 4294966656 }
  0x35   :  { %616 = dma.done.wait [#allocation6], 4096  }
  0x36   :  { %617 = vsyncadd [#allocation6], 4294963200  ;;  %v625_v0 = vmov 0.0|0.0   ;;  %vm626_vm0 = vmmov 0   ;;  %v627_v1 = vmov 0.0   ;;  %v67_v2 = vld [vmem:[#allocation5] sm:$0xff] }
  0x37   :  { %459 = vmatprep.subr.bf16.mxu0 %v625_v0  ;;  %397 = vmatprep.mubr.msk.f32.mxu0 %vm626_vm0, %v627_v1  ;;  %v68_v3 = vld [vmem:[#allocation5 + $0x8] sm:$0xff]  ;;  %v69_v4 = vld [vmem:[#allocation5 + $0x10] sm:$0xff]  ;;  %v70_v6 = vld [vmem:[#allocation5 + $0x18] sm:$0xff]  ;;  %s628_s8 = smov [#allocation8]  }
  0x38   :  { %483 = vmatprep.subr.bf16.mxu1 %v625_v0  ;;  %444 = vmatprep.mubr.msk.f32.mxu1 %vm626_vm0, %v627_v1  ;;  %v460_v5 = vpack.c.bf16 %v68_v3, %v67_v2  ;;  %v463_v7 = vpack.c.bf16 %v70_v6, %v69_v4  ;;  %v71_v8 = vld [vmem:[#allocation5 + $0x20] sm:$0xff]  ;;  %v72_v9 = vld [vmem:[#allocation5 + $0x28] sm:$0xff]  ;;  %v187_v13 = vld [vmem:[#allocation7 + $0x10] sm:$0xff]  ;;  %s308_s9 = sshll.u32 %s628_s8, 4  ;;  %s309_s9 = int_to_ptr.vmem [resolvable:$true] %s308_s9 }
  0x39   :  { %v466_v10 = vpack.c.bf16 %v72_v9, %v71_v8  ;;  %v185_v11 = vld [vmem:[#allocation7] sm:$0xff]  ;;  %v186_v12 = vld [vmem:[#allocation7 + $0x8] sm:$0xff]  ;;  %v73_v14 = vld [vmem:[#allocation5 + $0x30] sm:$0xff]  ;;  %p597_p11 = scmp.lt.s32.totalorder %s309_s9, %s309_s9 }
  0x3a   :  { %461 = vmatpush3.bf16.msra.mxu0 %v460_v5  ;;  %v74_v15 = vld [vmem:[#allocation5 + $0x38] sm:$0xff]  ;;  %v484_v16 = vpack.c.bf16 %v186_v12, %v185_v11  ;;  %v189_v20 = vld [vmem:[#allocation7 + $0x20] sm:$0xff]  ;;  %v190_v21 = vld [vmem:[#allocation7 + $0x28] sm:$0xff] }
  0x3b   :  { %462 = vmatprep.subr.bf16.mxu0 %v625_v0  ;;  %v188_v17 = vld [vmem:[#allocation7 + $0x18] sm:$0xff]  ;;  %v469_v19 = vpack.c.bf16 %v74_v15, %v73_v14  ;;  %v75_v22 = vld [vmem:[#allocation5 + $0x40] sm:$0xff]  ;;  %v76_v23 = vld [vmem:[#allocation5 + $0x48] sm:$0xff]  ;;  %v490_v24 = vpack.c.bf16 %v190_v21, %v189_v20 }
  0x3c   :  { %485 = vmatpush3.bf16.msra.mxu1 %v484_v16  ;;  %v487_v18 = vpack.c.bf16 %v188_v17, %v187_v13  ;;  %v472_v25 = vpack.c.bf16 %v76_v23, %v75_v22  ;;  %v191_v26 = vld [vmem:[#allocation7 + $0x30] sm:$0xff]  ;;  %v192_v27 = vld [vmem:[#allocation7 + $0x38] sm:$0xff]  ;;  %v193_v32 = vld [vmem:[#allocation7 + $0x40] sm:$0xff] }
  0x3d   :  { %486 = vmatprep.subr.bf16.mxu1 %v625_v0  ;;  %v77_v28 = vld [vmem:[#allocation5 + $0x50] sm:$0xff]  ;;  %v78_v29 = vld [vmem:[#allocation5 + $0x58] sm:$0xff]  ;;  %v493_v30 = vpack.c.bf16 %v192_v27, %v191_v26  ;;  %v194_v33 = vld [vmem:[#allocation7 + $0x48] sm:$0xff] }
  0x3e   :  { %464 = vmatpush3.bf16.msra.mxu0 %v463_v7  ;;  %v475_v31 = vpack.c.bf16 %v78_v29, %v77_v28  ;;  %v79_v34 = vld [vmem:[#allocation5 + $0x60] sm:$0xff]  ;;  %v80_v35 = vld [vmem:[#allocation5 + $0x68] sm:$0xff]  ;;  %v496_v36 = vpack.c.bf16 %v194_v33, %v193_v32  ;;  %v81_v38 = vld [vmem:[#allocation5 + $0x70] sm:$0xff] }
  0x3f   :  { %465 = vmatprep.subr.bf16.mxu0 %v625_v0  ;;  %v478_v37 = vpack.c.bf16 %v80_v35, %v79_v34  ;;  %v82_v39 = vld [vmem:[#allocation5 + $0x78] sm:$0xff]  ;;  %v63_v42 = vld [vmem:[#allocation2 + $0x8] sm:$0xff]  ;;  %v64_v43 = vld [vmem:[#allocation2 + $0x10] sm:$0xff] }
  0x40   :  { %488 = vmatpush3.bf16.msra.mxu1 %v487_v18  ;;  %v481_v40 = vpack.c.bf16 %v82_v39, %v81_v38  ;;  %v62_v41 = vld [vmem:[#allocation2] sm:$0xff]  ;;  %v65_v44 = vld [vmem:[#allocation2 + $0x18] sm:$0xff]  ;;  %v197_v49 = vld [vmem:[#allocation7 + $0x60] sm:$0xff] }
  0x41   :  { %489 = vmatprep.subr.bf16.mxu1 %v625_v0  ;;  %v66_v45 = vld [vmem:[#allocation2 + $0x20] sm:$0xff]  ;;  %v195_v46 = vld [vmem:[#allocation7 + $0x50] sm:$0xff]  ;;  %v198_v50 = vld [vmem:[#allocation7 + $0x68] sm:$0xff] }
  0x42   :  { %467 = vmatpush3.bf16.msra.mxu0 %v466_v10  ;;  %v196_v47 = vld [vmem:[#allocation7 + $0x58] sm:$0xff]  ;;  %v502_v51 = vpack.c.bf16 %v198_v50, %v197_v49  ;;  %v199_v52 = vld [vmem:[#allocation7 + $0x70] sm:$0xff] }
  0x43   :  { %468 = vmatprep.subr.bf16.mxu0 %v625_v0  ;;  %v499_v48 = vpack.c.bf16 %v196_v47, %v195_v46  ;;  %v200_v53 = vld [vmem:[#allocation7 + $0x78] sm:$0xff] }
  0x44   :  { %491 = vmatpush3.bf16.msra.mxu1 %v490_v24  ;;  %v505_v54 = vpack.c.bf16 %v200_v53, %v199_v52  ;;  %v321_v55 = vld [vmem:[%s770_s2] ss:$0 sm:$0xff] }
  0x45   :  { %492 = vmatprep.subr.bf16.mxu1 %v625_v0  ;;  %v322_v13 = vld [vmem:[%s772_s4] ss:$0 sm:$0xff]  ;;  %s592_s4 = scalar_lea.vmem %s309_s9, 640 }
  0x46   :  { %470 = vmatpush3.bf16.msra.mxu0 %v469_v19  ;;  %p593_p10 = scmp.ne.s32.totalorder %s309_s9, %s592_s4  ;;  %p598_p12 = scmp.lt.s32.totalorder %s592_s4, %s592_s4 }
  0x47   :  { %471 = vmatprep.subr.bf16.mxu0 %v625_v0 }
  0x48   :  { %494 = vmatpush3.bf16.msra.mxu1 %v493_v30  ;;  %p599_p13 = por %p598_p12, %p597_p11 }
  0x49   :  { %495 = vmatprep.subr.bf16.mxu1 %v625_v0 }
  0x4a   :  { %473 = vmatpush3.bf16.msra.mxu0 %v472_v25  ;;  %p600_p0 = pnand %p599_p13, %p593_p10 }
  0x4b   :  { %474 = vmatprep.subr.bf16.mxu0 %v625_v0 }
  0x4c   :  { %497 = vmatpush3.bf16.msra.mxu1 %v496_v36 }
  0x4d   :  { %498 = vmatprep.subr.bf16.mxu1 %v625_v0 }
  0x4e   :  { %476 = vmatpush3.bf16.msra.mxu0 %v475_v31 }
  0x4f   :  { %477 = vmatprep.subr.bf16.mxu0 %v625_v0 }
  0x50   :  { %500 = vmatpush3.bf16.msra.mxu1 %v499_v48 }
  0x51   :  { %501 = vmatprep.subr.bf16.mxu1 %v625_v0 }
  0x52   :  { %479 = vmatpush3.bf16.msra.mxu0 %v478_v37 }
  0x53   :  { %480 = vmatprep.subr.bf16.mxu0 %v625_v0 }
  0x54   :  { %503 = vmatpush3.bf16.msra.mxu1 %v502_v51 }
  0x55   :  { %504 = vmatprep.subr.bf16.mxu1 %v625_v0 }
  0x56   :  { %482 = vmatpush3.bf16.msra.mxu0 %v481_v40 }
  0x58   :  { %506 = vmatpush3.bf16.msra.mxu1 %v505_v54 }
  0x59   :  { %398 = vmatmul.mubr.f32.vlgmr.msra.gmra.mrb[0].mxu0 %v62_v41 }
  0x5a   :  { %400 = vmatprep.mubr.msk.f32.mxu0 %vm626_vm0, %v627_v1 }
  0x5d   :  { %401 = vmatmul.mubr.f32.gmra.mrb[2].mxu0 %v63_v42 }
  0x5e   :  { %403 = vmatprep.mubr.msk.f32.mxu0 %vm626_vm0, %v627_v1 }
  0x61   :  { %404 = vmatmul.mubr.f32.gmra.mrb[4].mxu0 %v64_v43 }
  0x62   :  { %406 = vmatprep.mubr.msk.f32.mxu0 %vm626_vm0, %v627_v1 }
  0x65   :  { %407 = vmatmul.mubr.f32.gmra.mrb[6].mxu0 %v65_v44 }
  0x66   :  { %409 = vmatprep.mubr.msk.f32.mxu0 %vm626_vm0, %v627_v1 }
  0x69   :  { %410 = vmatmul.mubr.f32.gmra.mrb[8].mxu0 %v66_v45 }
 0x12c   :  { %v156_v56 = vpop.f32.mrb[0].mxu0 }
 0x12d   :  { %v157_v57 = vadd.f32 %v321_v55, %v156_v56  ;;  %v399_v58 = vpop.f32.mrb[1].mxu0 }
 0x12f   :  { %516 = vtanh.f32 %v157_v57 }
 0x130   :  { %v161_v59 = vpop.f32.mrb[2].mxu0 }
 0x131   :  { %v162_v60 = vadd.f32 %v321_v55, %v161_v59  ;;  %v402_v61 = vpop.f32.mrb[3].mxu0 }
 0x133   :  { %518 = vtanh.f32 %v162_v60 }
 0x134   :  { %v166_v62 = vpop.f32.mrb[4].mxu0 }
 0x135   :  { %v167_v63 = vadd.f32 %v321_v55, %v166_v62  ;;  %v405_v2 = vpop.f32.mrb[5].mxu0 }
 0x137   :  { %520 = vtanh.f32 %v167_v63 }
 0x138   :  { %v171_v0 = vpop.f32.mrb[6].mxu0 }
 0x139   :  { %v517_v3 = vpop.eup %516  ;;  %v172_v4 = vadd.f32 %v321_v55, %v171_v0  ;;  %v408_v5 = vpop.f32.mrb[7].mxu0 }
 0x13a   :  { %445 = vmatmul.mubr.f32.vlgmr.msra.gmra.mrb[0].mxu1 %v517_v3 }
 0x13b   :  { %522 = vtanh.f32 %v172_v4  ;;  %447 = vmatprep.mubr.msk.f32.mxu1 %vm626_vm0, %v627_v1 }
 0x13c   :  { %v176_v6 = vpop.f32.mrb[8].mxu0 }
 0x13d   :  { %v519_v7 = vpop.eup %518  ;;  %v177_v8 = vadd.f32 %v321_v55, %v176_v6  ;;  %v411_v9 = vpop.f32.mrb[9].mxu0 }
 0x13e   :  { %448 = vmatmul.mubr.f32.gmra.mrb[2].mxu1 %v519_v7 }
 0x13f   :  { %524 = vtanh.f32 %v177_v8  ;;  %450 = vmatprep.mubr.msk.f32.mxu1 %vm626_vm0, %v627_v1 }
 0x141   :  { %v521_v10 = vpop.eup %520 }
 0x142   :  { %451 = vmatmul.mubr.f32.gmra.mrb[4].mxu1 %v521_v10 }
 0x143   :  { %453 = vmatprep.mubr.msk.f32.mxu1 %vm626_vm0, %v627_v1 }
 0x145   :  { %v523_v11 = vpop.eup %522 }
 0x146   :  { %454 = vmatmul.mubr.f32.gmra.mrb[6].mxu1 %v523_v11 }
 0x147   :  { %456 = vmatprep.mubr.msk.f32.mxu1 %vm626_vm0, %v627_v1 }
 0x149   :  { %v525_v12 = vpop.eup %524 }
 0x14a   :  { %457 = vmatmul.mubr.f32.gmra.mrb[8].mxu1 %v525_v12 }
 0x20d   :  { %v274_v14 = vpop.f32.mrb[0].mxu1 }
 0x20e   :  { %v275_v15 = vadd.f32 %v322_v13, %v274_v14  ;;  %v446_v16 = vpop.f32.mrb[1].mxu1 }
 0x210   :  { %298 = vst [vmem:[#allocation8] sm:$0xff] %v275_v15 }
 0x211   :  { %v279_v17 = vpop.f32.mrb[2].mxu1 }
 0x212   :  { %v280_v18 = vadd.f32 %v322_v13, %v279_v17  ;;  %v449_v19 = vpop.f32.mrb[3].mxu1 }
 0x214   :  { %299 = vst [vmem:[#allocation8 + $0x8] sm:$0xff] %v280_v18 }
 0x215   :  { %v284_v20 = vpop.f32.mrb[4].mxu1 }
 0x216   :  { %v285_v21 = vadd.f32 %v322_v13, %v284_v20  ;;  %v452_v22 = vpop.f32.mrb[5].mxu1 }
 0x218   :  { %300 = vst [vmem:[#allocation8 + $0x10] sm:$0xff] %v285_v21 }
 0x219   :  { %v289_v23 = vpop.f32.mrb[6].mxu1 }
 0x21a   :  { %v290_v1 = vadd.f32 %v322_v13, %v289_v23  ;;  %v455_v24 = vpop.f32.mrb[7].mxu1 }
 0x21c   :  { %301 = vst [vmem:[#allocation8 + $0x18] sm:$0xff] %v290_v1 }
 0x21d   :  { %v294_v25 = vpop.f32.mrb[8].mxu1 }
 0x21e   :  { %v295_v26 = vadd.f32 %v322_v13, %v294_v25  ;;  %v458_v27 = vpop.f32.mrb[9].mxu1 }
 0x220   :  { %302 = vst [vmem:[#allocation8 + $0x20] sm:$0xff] %v295_v26 }
 0x221   :  { %603 = shalt.err (!%p600_p0)
}
 0x222   :  { %s604_s12 = scalar_lea.hbm %s773_s5, 640 }
 0x223   :  { %p605_p1 = scmp.ne.s32.totalorder %s773_s5, %s604_s12  ;;  %p608_p2 = scmp.lt.u32.totalorder %s604_s12, %s773_s5 }
 0x225   :  { %p610_p3 = pnand %p608_p2, %p605_p1 }
 0x227   :  { %613 = shalt.err (!%p610_p3)
}
 0x228   :  { %314 = dma.vmem_to_hbm [thread:$0]  %s309_s9, 640, %s773_s5, [#allocation4], %s622_s30, %s622_s30, %s623_s6  }
 0x229   :  { %618 = dma.done.wait [#allocation4], 640  }
 0x22a   :  { %619 = vsyncadd [#allocation4], 4294966656 }
 0x22b   :  { %318 = vsyncpa [#allocation3], 1 }
 0x22c   :  { %319 = vsyncpa [#allocation6], 1 }
 0x22d   :  { %320 = vsyncpa [#allocation4], 1 }

// kernel: tpu_custom_call.1
= control target key start
LH: loop header
LB: loop body
LE: loop exit
PB: predicated region body
PF: predicated region fallthrough
CT: control target
= control target key end

     0   :  { %10 = vsyncpa [#allocation3], 0  ;;  %s768_s0 = inlined_call_operand.hbm [shape: f32[40,128], index: 0, kind: input, shape index: {}]   ;;  %s769_s1 = inlined_call_operand.hbm [shape: f32[128,128], index: 1, kind: input, shape index: {}]   ;;  %s770_s2 = inlined_call_operand.vmem [shape: f32[1,128], index: 2, kind: input, shape index: {}]   ;;  %s771_s3 = inlined_call_operand.hbm [shape: f32[128,128], index: 3, kind: input, shape index: {}]   ;;  %s772_s4 = inlined_call_operand.vmem [shape: f32[1,128], index: 4, kind: input, shape index: {}]   ;;  %s773_s5 = inlined_call_operand.hbm [shape: f32[40,128], index: 5, kind: output, shape index: {}]  }
   0x1   :  { %11 = vsyncpa [#allocation6], 0 }
   0x2   :  { %12 = vsyncpa [#allocation4], 0  ;;  %s620_s18 = smov [#allocation5]   ;;  %s621_s20 = smov [#allocation2]  }
   0x3   :  { %s30_s19 = sshll.u32 %s620_s18, 4  ;;  %s18_s21 = sshll.u32 %s621_s20, 4  ;;  %s31_s19 = int_to_ptr.vmem [resolvable:$true] %s30_s19  ;;  %s659_s21 = int_to_ptr.vmem [resolvable:$true] %s18_s21 }
   0x4   :  { %s526_s24 = scalar_lea.hbm %s769_s1, 2048 }
   0x5   :  { %p527_p0 = scmp.ne.s32.totalorder %s769_s1, %s526_s24  ;;  %p530_p1 = scmp.lt.u32.totalorder %s526_s24, %s769_s1 }
   0x7   :  { %p532_p2 = pnand %p530_p1, %p527_p0 }
   0x9   :  { %535 = shalt.err (!%p532_p2)
}
   0xa   :  { %s536_s29 = scalar_lea.vmem %s31_s19, 2048  ;;  %p541_p4 = scmp.lt.s32.totalorder %s31_s19, %s31_s19 }
   0xb   :  { %p537_p3 = scmp.ne.s32.totalorder %s31_s19, %s536_s29  ;;  %p542_p5 = scmp.lt.s32.totalorder %s536_s29, %s536_s29 }
   0xd   :  { %p543_p6 = por %p542_p5, %p541_p4 }
   0xf   :  { %p544_p7 = pnand %p543_p6, %p537_p3 }
  0x11   :  { %547 = shalt.err (!%p544_p7)
}
  0x12   :  { %s622_s30 = smov 128   ;;  %s623_s6 = smov 8  }
  0x13   :  { %36 = dma.hbm_to_vmem [thread:$0]  %s769_s1, 2048, %s31_s19, [#allocation6], %s622_s30, %s622_s30, %s623_s6  }
  0x14   :  { %s548_s11 = scalar_lea.hbm %s768_s0, 640 }
  0x15   :  { %p549_p8 = scmp.ne.s32.totalorder %s768_s0, %s548_s11  ;;  %p552_p9 = scmp.lt.u32.totalorder %s548_s11, %s768_s0 }
  0x17   :  { %p554_p10 = pnand %p552_p9, %p549_p8 }
  0x19   :  { %557 = shalt.err (!%p554_p10)
}
  0x1a   :  { %s558_s16 = scalar_lea.vmem %s659_s21, 640  ;;  %p563_p12 = scmp.lt.s32.totalorder %s659_s21, %s659_s21 }
  0x1b   :  { %p559_p11 = scmp.ne.s32.totalorder %s659_s21, %s558_s16  ;;  %p564_p13 = scmp.lt.s32.totalorder %s558_s16, %s558_s16 }
  0x1d   :  { %p565_p0 = por %p564_p13, %p563_p12 }
  0x1f   :  { %p566_p1 = pnand %p565_p0, %p559_p11 }
  0x21   :  { %569 = shalt.err (!%p566_p1)
}
  0x22   :  { %24 = dma.hbm_to_vmem [thread:$0]  %s768_s0, 640, %s659_s21, [#allocation3], %s622_s30, %s622_s30, %s623_s6  }
  0x23   :  { %s624_s18 = smov [#allocation7]   ;;  %s570_s23 = scalar_lea.hbm %s771_s3, 2048 }
  0x24   :  { %s44_s19 = sshll.u32 %s624_s18, 4  ;;  %p571_p2 = scmp.ne.s32.totalorder %s771_s3, %s570_s23  ;;  %s45_s19 = int_to_ptr.vmem [resolvable:$true] %s44_s19 }
  0x25   :  { %p574_p3 = scmp.lt.u32.totalorder %s570_s23, %s771_s3 }
  0x27   :  { %p576_p4 = pnand %p574_p3, %p571_p2 }
  0x29   :  { %579 = shalt.err (!%p576_p4)
}
  0x2a   :  { %s580_s28 = scalar_lea.vmem %s45_s19, 2048  ;;  %p585_p6 = scmp.lt.s32.totalorder %s45_s19, %s45_s19 }
  0x2b   :  { %p581_p5 = scmp.ne.s32.totalorder %s45_s19, %s580_s28  ;;  %p586_p7 = scmp.lt.s32.totalorder %s580_s28, %s580_s28 }
  0x2d   :  { %p587_p8 = por %p586_p7, %p585_p6 }
  0x2f   :  { %p588_p9 = pnand %p587_p8, %p581_p5 }
  0x31   :  { %591 = shalt.err (!%p588_p9)
}
  0x32   :  { %50 = dma.hbm_to_vmem [thread:$0]  %s771_s3, 2048, %s45_s19, [#allocation6], %s622_s30, %s622_s30, %s623_s6  }
  0x33   :  { %614 = dma.done.wait [#allocation3], 640  }
  0x34   :  { %615 = vsyncadd [#allocation3], 4294966656 }
  0x35   :  { %616 = dma.done.wait [#allocation6], 4096  }
  0x36   :  { %617 = vsyncadd [#allocation6], 4294963200  ;;  %v625_v0 = vmov 0.0|0.0   ;;  %vm626_vm0 = vmmov 0   ;;  %v627_v1 = vmov 0.0   ;;  %v67_v2 = vld [vmem:[#allocation5] sm:$0xff] }
  0x37   :  { %459 = vmatprep.subr.bf16.mxu0 %v625_v0  ;;  %397 = vmatprep.mubr.msk.f32.mxu0 %vm626_vm0, %v627_v1  ;;  %v68_v3 = vld [vmem:[#allocation5 + $0x8] sm:$0xff]  ;;  %v69_v4 = vld [vmem:[#allocation5 + $0x10] sm:$0xff]  ;;  %v70_v6 = vld [vmem:[#allocation5 + $0x18] sm:$0xff]  ;;  %s628_s8 = smov [#allocation8]  }
  0x38   :  { %483 = vmatprep.subr.bf16.mxu1 %v625_v0  ;;  %444 = vmatprep.mubr.msk.f32.mxu1 %vm626_vm0, %v627_v1  ;;  %v460_v5 = vpack.c.bf16 %v68_v3, %v67_v2  ;;  %v463_v7 = vpack.c.bf16 %v70_v6, %v69_v4  ;;  %v71_v8 = vld [vmem:[#allocation5 + $0x20] sm:$0xff]  ;;  %v72_v9 = vld [vmem:[#allocation5 + $0x28] sm:$0xff]  ;;  %v187_v13 = vld [vmem:[#allocation7 + $0x10] sm:$0xff]  ;;  %s308_s9 = sshll.u32 %s628_s8, 4  ;;  %s309_s9 = int_to_ptr.vmem [resolvable:$true] %s308_s9 }
  0x39   :  { %v466_v10 = vpack.c.bf16 %v72_v9, %v71_v8  ;;  %v185_v11 = vld [vmem:[#allocation7] sm:$0xff]  ;;  %v186_v12 = vld [vmem:[#allocation7 + $0x8] sm:$0xff]  ;;  %v73_v14 = vld [vmem:[#allocation5 + $0x30] sm:$0xff]  ;;  %p597_p11 = scmp.lt.s32.totalorder %s309_s9, %s309_s9 }
  0x3a   :  { %461 = vmatpush3.bf16.msra.mxu0 %v460_v5  ;;  %v74_v15 = vld [vmem:[#allocation5 + $0x38] sm:$0xff]  ;;  %v484_v16 = vpack.c.bf16 %v186_v12, %v185_v11  ;;  %v189_v20 = vld [vmem:[#allocation7 + $0x20] sm:$0xff]  ;;  %v190_v21 = vld [vmem:[#allocation7 + $0x28] sm:$0xff] }
  0x3b   :  { %462 = vmatprep.subr.bf16.mxu0 %v625_v0  ;;  %v188_v17 = vld [vmem:[#allocation7 + $0x18] sm:$0xff]  ;;  %v469_v19 = vpack.c.bf16 %v74_v15, %v73_v14  ;;  %v75_v22 = vld [vmem:[#allocation5 + $0x40] sm:$0xff]  ;;  %v76_v23 = vld [vmem:[#allocation5 + $0x48] sm:$0xff]  ;;  %v490_v24 = vpack.c.bf16 %v190_v21, %v189_v20 }
  0x3c   :  { %485 = vmatpush3.bf16.msra.mxu1 %v484_v16  ;;  %v487_v18 = vpack.c.bf16 %v188_v17, %v187_v13  ;;  %v472_v25 = vpack.c.bf16 %v76_v23, %v75_v22  ;;  %v191_v26 = vld [vmem:[#allocation7 + $0x30] sm:$0xff]  ;;  %v192_v27 = vld [vmem:[#allocation7 + $0x38] sm:$0xff]  ;;  %v193_v32 = vld [vmem:[#allocation7 + $0x40] sm:$0xff] }
  0x3d   :  { %486 = vmatprep.subr.bf16.mxu1 %v625_v0  ;;  %v77_v28 = vld [vmem:[#allocation5 + $0x50] sm:$0xff]  ;;  %v78_v29 = vld [vmem:[#allocation5 + $0x58] sm:$0xff]  ;;  %v493_v30 = vpack.c.bf16 %v192_v27, %v191_v26  ;;  %v194_v33 = vld [vmem:[#allocation7 + $0x48] sm:$0xff] }
  0x3e   :  { %464 = vmatpush3.bf16.msra.mxu0 %v463_v7  ;;  %v475_v31 = vpack.c.bf16 %v78_v29, %v77_v28  ;;  %v79_v34 = vld [vmem:[#allocation5 + $0x60] sm:$0xff]  ;;  %v80_v35 = vld [vmem:[#allocation5 + $0x68] sm:$0xff]  ;;  %v496_v36 = vpack.c.bf16 %v194_v33, %v193_v32  ;;  %v81_v38 = vld [vmem:[#allocation5 + $0x70] sm:$0xff] }
  0x3f   :  { %465 = vmatprep.subr.bf16.mxu0 %v625_v0  ;;  %v478_v37 = vpack.c.bf16 %v80_v35, %v79_v34  ;;  %v82_v39 = vld [vmem:[#allocation5 + $0x78] sm:$0xff]  ;;  %v63_v42 = vld [vmem:[#allocation2 + $0x8] sm:$0xff]  ;;  %v64_v43 = vld [vmem:[#allocation2 + $0x10] sm:$0xff] }
  0x40   :  { %488 = vmatpush3.bf16.msra.mxu1 %v487_v18  ;;  %v481_v40 = vpack.c.bf16 %v82_v39, %v81_v38  ;;  %v62_v41 = vld [vmem:[#allocation2] sm:$0xff]  ;;  %v65_v44 = vld [vmem:[#allocation2 + $0x18] sm:$0xff]  ;;  %v197_v49 = vld [vmem:[#allocation7 + $0x60] sm:$0xff] }
  0x41   :  { %489 = vmatprep.subr.bf16.mxu1 %v625_v0  ;;  %v66_v45 = vld [vmem:[#allocation2 + $0x20] sm:$0xff]  ;;  %v195_v46 = vld [vmem:[#allocation7 + $0x50] sm:$0xff]  ;;  %v198_v50 = vld [vmem:[#allocation7 + $0x68] sm:$0xff] }
  0x42   :  { %467 = vmatpush3.bf16.msra.mxu0 %v466_v10  ;;  %v196_v47 = vld [vmem:[#allocation7 + $0x58] sm:$0xff]  ;;  %v502_v51 = vpack.c.bf16 %v198_v50, %v197_v49  ;;  %v199_v52 = vld [vmem:[#allocation7 + $0x70] sm:$0xff] }
  0x43   :  { %468 = vmatprep.subr.bf16.mxu0 %v625_v0  ;;  %v499_v48 = vpack.c.bf16 %v196_v47, %v195_v46  ;;  %v200_v53 = vld [vmem:[#allocation7 + $0x78] sm:$0xff] }
  0x44   :  { %491 = vmatpush3.bf16.msra.mxu1 %v490_v24  ;;  %v505_v54 = vpack.c.bf16 %v200_v53, %v199_v52  ;;  %v321_v55 = vld [vmem:[%s770_s2] ss:$0 sm:$0xff] }
  0x45   :  { %492 = vmatprep.subr.bf16.mxu1 %v625_v0  ;;  %v322_v13 = vld [vmem:[%s772_s4] ss:$0 sm:$0xff]  ;;  %s592_s4 = scalar_lea.vmem %s309_s9, 640 }
  0x46   :  { %470 = vmatpush3.bf16.msra.mxu0 %v469_v19  ;;  %p593_p10 = scmp.ne.s32.totalorder %s309_s9, %s592_s4  ;;  %p598_p12 = scmp.lt.s32.totalorder %s592_s4, %s592_s4 }
  0x47   :  { %471 = vmatprep.subr.bf16.mxu0 %v625_v0 }
  0x48   :  { %494 = vmatpush3.bf16.msra.mxu1 %v493_v30  ;;  %p599_p13 = por %p598_p12, %p597_p11 }
  0x49   :  { %495 = vmatprep.subr.bf16.mxu1 %v625_v0 }
  0x4a   :  { %473 = vmatpush3.bf16.msra.mxu0 %v472_v25  ;;  %p600_p0 = pnand %p599_p13, %p593_p10 }
  0x4b   :  { %474 = vmatprep.subr.bf16.mxu0 %v625_v0 }
  0x4c   :  { %497 = vmatpush3.bf16.msra.mxu1 %v496_v36 }
  0x4d   :  { %498 = vmatprep.subr.bf16.mxu1 %v625_v0 }
  0x4e   :  { %476 = vmatpush3.bf16.msra.mxu0 %v475_v31 }
  0x4f   :  { %477 = vmatprep.subr.bf16.mxu0 %v625_v0 }
  0x50   :  { %500 = vmatpush3.bf16.msra.mxu1 %v499_v48 }
  0x51   :  { %501 = vmatprep.subr.bf16.mxu1 %v625_v0 }
  0x52   :  { %479 = vmatpush3.bf16.msra.mxu0 %v478_v37 }
  0x53   :  { %480 = vmatprep.subr.bf16.mxu0 %v625_v0 }
  0x54   :  { %503 = vmatpush3.bf16.msra.mxu1 %v502_v51 }
  0x55   :  { %504 = vmatprep.subr.bf16.mxu1 %v625_v0 }
  0x56   :  { %482 = vmatpush3.bf16.msra.mxu0 %v481_v40 }
  0x58   :  { %506 = vmatpush3.bf16.msra.mxu1 %v505_v54 }
  0x59   :  { %398 = vmatmul.mubr.f32.vlgmr.msra.gmra.mrb[0].mxu0 %v62_v41 }
  0x5a   :  { %400 = vmatprep.mubr.msk.f32.mxu0 %vm626_vm0, %v627_v1 }
  0x5d   :  { %401 = vmatmul.mubr.f32.gmra.mrb[2].mxu0 %v63_v42 }
  0x5e   :  { %403 = vmatprep.mubr.msk.f32.mxu0 %vm626_vm0, %v627_v1 }
  0x61   :  { %404 = vmatmul.mubr.f32.gmra.mrb[4].mxu0 %v64_v43 }
  0x62   :  { %406 = vmatprep.mubr.msk.f32.mxu0 %vm626_vm0, %v627_v1 }
  0x65   :  { %407 = vmatmul.mubr.f32.gmra.mrb[6].mxu0 %v65_v44 }
  0x66   :  { %409 = vmatprep.mubr.msk.f32.mxu0 %vm626_vm0, %v627_v1 }
  0x69   :  { %410 = vmatmul.mubr.f32.gmra.mrb[8].mxu0 %v66_v45 }
 0x12c   :  { %v156_v56 = vpop.f32.mrb[0].mxu0 }
 0x12d   :  { %v157_v57 = vadd.f32 %v321_v55, %v156_v56  ;;  %v399_v58 = vpop.f32.mrb[1].mxu0 }
 0x12f   :  { %516 = vtanh.f32 %v157_v57 }
 0x130   :  { %v161_v59 = vpop.f32.mrb[2].mxu0 }
 0x131   :  { %v162_v60 = vadd.f32 %v321_v55, %v161_v59  ;;  %v402_v61 = vpop.f32.mrb[3].mxu0 }
 0x133   :  { %518 = vtanh.f32 %v162_v60 }
 0x134   :  { %v166_v62 = vpop.f32.mrb[4].mxu0 }
 0x135   :  { %v167_v63 = vadd.f32 %v321_v55, %v166_v62  ;;  %v405_v2 = vpop.f32.mrb[5].mxu0 }
 0x137   :  { %520 = vtanh.f32 %v167_v63 }
 0x138   :  { %v171_v0 = vpop.f32.mrb[6].mxu0 }
 0x139   :  { %v517_v3 = vpop.eup %516  ;;  %v172_v4 = vadd.f32 %v321_v55, %v171_v0  ;;  %v408_v5 = vpop.f32.mrb[7].mxu0 }
 0x13a   :  { %445 = vmatmul.mubr.f32.vlgmr.msra.gmra.mrb[0].mxu1 %v517_v3 }
 0x13b   :  { %522 = vtanh.f32 %v172_v4  ;;  %447 = vmatprep.mubr.msk.f32.mxu1 %vm626_vm0, %v627_v1 }
 0x13c   :  { %v176_v6 = vpop.f32.mrb[8].mxu0 }
 0x13d   :  { %v519_v7 = vpop.eup %518  ;;  %v177_v8 = vadd.f32 %v321_v55, %v176_v6  ;;  %v411_v9 = vpop.f32.mrb[9].mxu0 }
 0x13e   :  { %448 = vmatmul.mubr.f32.gmra.mrb[2].mxu1 %v519_v7 }
 0x13f   :  { %524 = vtanh.f32 %v177_v8  ;;  %450 = vmatprep.mubr.msk.f32.mxu1 %vm626_vm0, %v627_v1 }
 0x141   :  { %v521_v10 = vpop.eup %520 }
 0x142   :  { %451 = vmatmul.mubr.f32.gmra.mrb[4].mxu1 %v521_v10 }
 0x143   :  { %453 = vmatprep.mubr.msk.f32.mxu1 %vm626_vm0, %v627_v1 }
 0x145   :  { %v523_v11 = vpop.eup %522 }
 0x146   :  { %454 = vmatmul.mubr.f32.gmra.mrb[6].mxu1 %v523_v11 }
 0x147   :  { %456 = vmatprep.mubr.msk.f32.mxu1 %vm626_vm0, %v627_v1 }
 0x149   :  { %v525_v12 = vpop.eup %524 }
 0x14a   :  { %457 = vmatmul.mubr.f32.gmra.mrb[8].mxu1 %v525_v12 }
 0x20d   :  { %v274_v14 = vpop.f32.mrb[0].mxu1 }
 0x20e   :  { %v275_v15 = vadd.f32 %v322_v13, %v274_v14  ;;  %v446_v16 = vpop.f32.mrb[1].mxu1 }
 0x210   :  { %298 = vst [vmem:[#allocation8] sm:$0xff] %v275_v15 }
 0x211   :  { %v279_v17 = vpop.f32.mrb[2].mxu1 }
 0x212   :  { %v280_v18 = vadd.f32 %v322_v13, %v279_v17  ;;  %v449_v19 = vpop.f32.mrb[3].mxu1 }
 0x214   :  { %299 = vst [vmem:[#allocation8 + $0x8] sm:$0xff] %v280_v18 }
 0x215   :  { %v284_v20 = vpop.f32.mrb[4].mxu1 }
 0x216   :  { %v285_v21 = vadd.f32 %v322_v13, %v284_v20  ;;  %v452_v22 = vpop.f32.mrb[5].mxu1 }
 0x218   :  { %300 = vst [vmem:[#allocation8 + $0x10] sm:$0xff] %v285_v21 }
 0x219   :  { %v289_v23 = vpop.f32.mrb[6].mxu1 }
 0x21a   :  { %v290_v1 = vadd.f32 %v322_v13, %v289_v23  ;;  %v455_v24 = vpop.f32.mrb[7].mxu1 }
 0x21c   :  { %301 = vst [vmem:[#allocation8 + $0x18] sm:$0xff] %v290_v1 }
 0x21d   :  { %v294_v25 = vpop.f32.mrb[8].mxu1 }
 0x21e   :  { %v295_v26 = vadd.f32 %v322_v13, %v294_v25  ;;  %v458_v27 = vpop.f32.mrb[9].mxu1 }
 0x220   :  { %302 = vst [vmem:[#allocation8 + $0x20] sm:$0xff] %v295_v26 }
 0x221   :  { %603 = shalt.err (!%p600_p0)
}
 0x222   :  { %s604_s12 = scalar_lea.hbm %s773_s5, 640 }
 0x223   :  { %p605_p1 = scmp.ne.s32.totalorder %s773_s5, %s604_s12  ;;  %p608_p2 = scmp.lt.u32.totalorder %s604_s12, %s773_s5 }
 0x225   :  { %p610_p3 = pnand %p608_p2, %p605_p1 }
 0x227   :  { %613 = shalt.err (!%p610_p3)
}
 0x228   :  { %314 = dma.vmem_to_hbm [thread:$0]  %s309_s9, 640, %s773_s5, [#allocation4], %s622_s30, %s622_s30, %s623_s6  }
 0x229   :  { %618 = dma.done.wait [#allocation4], 640  }
 0x22a   :  { %619 = vsyncadd [#allocation4], 4294966656 }
 0x22b   :  { %318 = vsyncpa [#allocation3], 1 }
 0x22c   :  { %319 = vsyncpa [#allocation6], 1 }
 0x22d   :  { %320 = vsyncpa [#allocation4], 1 }

</bundles_post_ra>
